<compile_context>
chip_gen: v5e
topology: v5e:2x2
jax: 0.10.0
libtpu: 0.0.40
codegen_flags: <defaults>
</compile_context>

<pallas_src>
import math

import jax
import jax.numpy as jnp
from jax import lax
from jax.experimental import pallas as pl
from jax.experimental.pallas import tpu as pltpu

_INV_SQRT2 = 1.0 / math.sqrt(2.0)


# --------------------------------------------------------------------------- #
# helpers
# --------------------------------------------------------------------------- #
def _round_up(x, m):
    return ((x + m - 1) // m) * m


def _ceil_div(a, b):
    return (a + b - 1) // b


def _vmem_capacity_bytes():
    """Per-TensorCore VMEM capacity; conservative 64 MiB fallback (v7x)."""
    try:
        cap = int(pltpu.get_tpu_info().vmem_capacity_bytes)
        if cap > 0:
            return min(cap, 128 * 1024 * 1024)
    except Exception:
        pass
    return 64 * 1024 * 1024


def _choose_tile(total, target, unit):
    """Tile size: multiple of `unit`, <= round_up(target, unit), near-divisor
    of `total` (itself a multiple of `unit`) to minimize padding waste.
    Returns (tile, num_tiles)."""
    target = max(unit, min(_round_up(target, unit), total))
    num = _ceil_div(total, target)
    tile = _round_up(_ceil_div(total, num), unit)
    return tile, num


def _gelu(h):
    # exact GELU (erf formulation, matches torch.nn.GELU default).
    # NOTE: lax.erf lowers to a VPU polynomial on TPU (not the EUP); for very
    # narrow MLPs the VALU, not the MXU, can become the binding unit.
    return 0.5 * h * (1.0 + lax.erf(h * _INV_SQRT2))


# --------------------------------------------------------------------------- #
# kernels
# --------------------------------------------------------------------------- #
def _mlp_resident_kernel(x_ref, w1_ref, b1_ref, w2_ref, b2_ref, o_ref):
    # grid = (M tiles,)  — weights have constant index maps -> DMA'd once.
    x = x_ref[...].astype(w1_ref.dtype)
    h = jnp.dot(x, w1_ref[...], preferred_element_type=jnp.float32)
    h = _gelu(h + b1_ref[...].astype(jnp.float32))
    out = jnp.dot(h.astype(w2_ref.dtype), w2_ref[...],
                  preferred_element_type=jnp.float32)
    o_ref[...] = (out + b2_ref[...].astype(jnp.float32)).astype(o_ref.dtype)


def _mlp_stream_kernel(x_ref, w1_ref, b1_ref, w2_ref, b2_ref, o_ref, acc_ref):
    # grid = (M tiles [parallel], N tiles [parallel], hidden chunks [arbitrary])
    k = pl.program_id(2)

    @pl.when(k == 0)
    def _():
        # fold b2 into the accumulator init -> no '+ b2' epilogue pass
        acc_ref[...] = jnp.broadcast_to(
            b2_ref[...].astype(jnp.float32), acc_ref.shape)

    x = x_ref[...].astype(w1_ref.dtype)        # both fc1 operands in weight dtype
    h = jnp.dot(x, w1_ref[...], preferred_element_type=jnp.float32)
    h = _gelu(h + b1_ref[...].astype(jnp.float32))
    acc_ref[...] += jnp.dot(h.astype(w2_ref.dtype), w2_ref[...],
                            preferred_element_type=jnp.float32)

    @pl.when(k == pl.num_programs(2) - 1)
    def _():
        o_ref[...] = acc_ref[...].astype(o_ref.dtype)


# --------------------------------------------------------------------------- #
# wrapper
# --------------------------------------------------------------------------- #
def mlp_pallas(x, w1, b1, w2, b2, *, mode="auto",
               tile_m=None, tile_h=512, tile_n=1024,
               vmem_budget_bytes=None):
    """x: (..., in_features) -> (..., out_features).

    mode: "auto" (default), "resident" (force weight residency),
          "stream" (force hidden-reduction streaming).
    """
    if mode not in ("auto", "resident", "stream"):
        raise ValueError(f"unknown mode {mode!r}")

    in_features = x.shape[-1]
    hidden = w1.shape[1]
    out_features = w2.shape[1]
    lead_shape = x.shape[:-1]
    out_dtype = x.dtype
    M = math.prod(lead_shape) if lead_shape else 1
    x_flat = x.reshape(M, in_features)

    # Keep both fc1 operands in the (narrower) weight dtype: full-rate MXU and
    # halved activation DMA when weights are bf16.
    if jnp.dtype(w1.dtype).itemsize < jnp.dtype(x_flat.dtype).itemsize:
        x_flat = x_flat.astype(w1.dtype)

    x_bytes = jnp.dtype(x_flat.dtype).itemsize
    w_bytes = jnp.dtype(w1.dtype).itemsize
    o_bytes = jnp.dtype(out_dtype).itemsize
    sublane = max(8, 32 // x_bytes)            # 8 f32 / 16 bf16 / 32 int8-fp8

    vmem_cap = _vmem_capacity_bytes()
    budget = (vmem_budget_bytes if vmem_budget_bytes is not None
              else int(vmem_cap * 0.7))
    vmem_limit = min(int(vmem_cap * 0.9), 128 * 1024 * 1024)

    M_round = _round_up(M, sublane)
    H_pad = _round_up(hidden, 128)             # lane-dense fc1 out / fc2 in
    N_pad = _round_up(out_features, 128)       # lane-dense output slab

    tm_target_resident = tile_m if tile_m is not None else 512
    tm_target_stream = tile_m if tile_m is not None else 1024

    # ---- resident-weight decision ----------------------------------------- #
    weight_bytes = (in_features * H_pad * w_bytes + H_pad * N_pad * w_bytes
                    + (H_pad + N_pad) * 4)
    use_resident = False
    tm = sublane
    if mode in ("auto", "resident"):
        if mode == "resident" or weight_bytes <= 0.45 * budget:
            per_row = (2 * in_features * x_bytes      # x tile, double-buffered
                       + 2 * H_pad * 4                # f32 h + GELU temporaries
                       + 2 * N_pad * o_bytes)         # out tile, double-buffered
            avail = budget - weight_bytes
            cap_rows = max(0, (avail // per_row)) // sublane * sublane
            if cap_rows >= sublane:
                use_resident = True
                tm = min(tm_target_resident, cap_rows, M_round)
            elif mode == "resident":
                raise ValueError("weights + minimum activation tile exceed the "
                                 "VMEM budget; use mode='stream'")

    # ---- streamed-path tile fitting ---------------------------------------- #
    if not use_resident:
        th, _ = _choose_tile(H_pad, tile_h, 128)
        tn, _ = _choose_tile(N_pad, tile_n, 128)
        tm = min(tm_target_stream, M_round)

        def _footprint(tm_, th_, tn_):
            return (2 * tm_ * in_features * x_bytes    # x tile
                    + 2 * in_features * th_ * w_bytes  # w1 tile
                    + 2 * th_ * tn_ * w_bytes          # w2 tile
                    + 2 * (th_ + tn_) * 4              # biases
                    + 2 * tm_ * tn_ * o_bytes          # out tile
                    + tm_ * tn_ * 4                    # f32 accumulator
                    + 2 * tm_ * th_ * 4)               # f32 h + temporaries

        while (_footprint(tm, th, tn) > budget
               and (th > 128 or tn > 128 or tm > sublane)):
            if th > 128:
                th = max(128, _round_up(th // 2, 128))
            elif tn > 128:
                tn = max(128, _round_up(tn // 2, 128))
            else:
                tm = max(sublane, _round_up(tm // 2, sublane))
        # TODO(synk): for extremely large in_features the (tile_m, in) /
        # (in, tile_h) tiles can still exceed VMEM; an inner emit_pipeline over
        # in_features chunks would be needed there.

        th, num_k = _choose_tile(H_pad, th, 128)
        tn, num_n = _choose_tile(N_pad, tn, 128)
        H_tot, N_tot = th * num_k, tn * num_n
    else:
        H_tot, N_tot = H_pad, N_pad

    tm, num_m = _choose_tile(M_round, tm, sublane)
    M_pad = tm * num_m

    # ---- zero padding (padded hidden cols give GELU(0)=0 -> contribute
    #      nothing; padded M rows / out cols are sliced off below) ----------- #
    if M_pad != M:
        x_flat = jnp.pad(x_flat, ((0, M_pad - M), (0, 0)))
    b1_2d = b1.reshape(1, hidden)
    b2_2d = b2.reshape(1, out_features)
    w1_p, w2_p = w1, w2
    if H_tot != hidden:
        w1_p = jnp.pad(w1_p, ((0, 0), (0, H_tot - hidden)))
        b1_2d = jnp.pad(b1_2d, ((0, 0), (0, H_tot - hidden)))
        w2_p = jnp.pad(w2_p, ((0, H_tot - hidden), (0, 0)))
    if N_tot != out_features:
        w2_p = jnp.pad(w2_p, ((0, 0), (0, N_tot - out_features)))
        b2_2d = jnp.pad(b2_2d, ((0, 0), (0, N_tot - out_features)))

    if use_resident:
        out_flat = pl.pallas_call(
            _mlp_resident_kernel,
            out_shape=jax.ShapeDtypeStruct((M_pad, N_tot), out_dtype),
            grid_spec=pltpu.PrefetchScalarGridSpec(
                num_scalar_prefetch=0,
                grid=(num_m,),
                in_specs=[
                    # activations: one M tile per grid step
                    pl.BlockSpec((tm, in_features), lambda i: (i, 0)),
                    # weights / biases: constant index maps -> DMA'd once
                    pl.BlockSpec((in_features, H_tot), lambda i: (0, 0)),
                    pl.BlockSpec((1, H_tot), lambda i: (0, 0)),
                    pl.BlockSpec((H_tot, N_tot), lambda i: (0, 0)),
                    pl.BlockSpec((1, N_tot), lambda i: (0, 0)),
                ],
                out_specs=pl.BlockSpec((tm, N_tot), lambda i: (i, 0)),
            ),
            compiler_params=pltpu.CompilerParams(
                dimension_semantics=("parallel",),
                vmem_limit_bytes=vmem_limit,
            ),
        )(x_flat, w1_p, b1_2d, w2_p, b2_2d)
    else:
        out_flat = pl.pallas_call(
            _mlp_stream_kernel,
            out_shape=jax.ShapeDtypeStruct((M_pad, N_tot), out_dtype),
            grid_spec=pltpu.PrefetchScalarGridSpec(
                num_scalar_prefetch=0,
                grid=(num_m, num_n, num_k),
                in_specs=[
                    # activations: constant over the N and hidden axes
                    pl.BlockSpec((tm, in_features), lambda i, j, k: (i, 0)),
                    # fc1 weight / bias: streamed over hidden chunks
                    pl.BlockSpec((in_features, th), lambda i, j, k: (0, k)),
                    pl.BlockSpec((1, th), lambda i, j, k: (0, k)),
                    # fc2 weight: streamed over hidden chunks, tiled over N
                    pl.BlockSpec((th, tn), lambda i, j, k: (k, j)),
                    # fc2 bias: tiled over N
                    pl.BlockSpec((1, tn), lambda i, j, k: (0, j)),
                ],
                # same output block across k -> resident accumulator pattern
                out_specs=pl.BlockSpec((tm, tn), lambda i, j, k: (i, j)),
                scratch_shapes=[pltpu.VMEM((tm, tn), jnp.float32)],
            ),
            compiler_params=pltpu.CompilerParams(
                dimension_semantics=("parallel", "parallel", "arbitrary"),
                vmem_limit_bytes=vmem_limit,
            ),
        )(x_flat, w1_p, b1_2d, w2_p, b2_2d)

    out = out_flat[:M, :out_features]
    return out.reshape(*lead_shape, out_features)


def init_mlp_params(key, in_features, hidden_features, out_features,
                    dtype=jnp.float32):
    """Deterministic init mirroring nn.Linear shapes (weights stored transposed)."""
    k1, k2, k3, k4 = jax.random.split(key, 4)
    bound1 = 1.0 / math.sqrt(in_features)
    bound2 = 1.0 / math.sqrt(hidden_features)
    w1 = jax.random.uniform(k1, (in_features, hidden_features), dtype, -bound1, bound1)
    b1 = jax.random.uniform(k2, (hidden_features,), dtype, -bound1, bound1)
    w2 = jax.random.uniform(k3, (hidden_features, out_features), dtype, -bound2, bound2)
    b2 = jax.random.uniform(k4, (out_features,), dtype, -bound2, bound2)
    return w1, b1, w2, b2


if __name__ == "__main__":
    # small shapes consistent with a transformer-style MLP: (batch, seq, in_features)
    batch, seq, in_features = 2, 8, 32
    hidden_features = 64
    out_features = 32

    key = jax.random.PRNGKey(0)
    kx, kp = jax.random.split(key)
    x = jax.random.normal(kx, (batch, seq, in_features), dtype=jnp.float32)
    w1, b1, w2, b2 = init_mlp_params(kp, in_features, hidden_features, out_features)

    # pure-JAX reference (exact GELU, dropout p=0 is identity)
    h_ref = x.reshape(-1, in_features) @ w1 + b1
    h_ref = 0.5 * h_ref * (1.0 + lax.erf(h_ref / math.sqrt(2.0)))
    o_ref = (h_ref @ w2 + b2).reshape(batch, seq, out_features)

    # resident-weight path (auto selects it: weights are tiny here)
    out_res = jax.block_until_ready(mlp_pallas(x, w1, b1, w2, b2, mode="auto"))
    assert out_res.shape == o_ref.shape
    assert jnp.allclose(out_res, o_ref, atol=1e-5, rtol=1e-5)

    # streamed-weight path (forced, exercises the M/N/hidden reduction grid)
    out_str = jax.block_until_ready(mlp_pallas(x, w1, b1, w2, b2, mode="stream"))
    assert out_str.shape == o_ref.shape
    assert jnp.allclose(out_str, o_ref, atol=1e-5, rtol=1e-5)

    print("KERNEL_OK")
</pallas_src>

<mosaic_0001>
module attributes {stable_mosaic.version = 11 : i64} {
  func.func @_mlp_resident_kernel(%arg0: i32, %arg1: memref<16x32xf32, #tpu.memory_space<vmem>>, %arg2: memref<32x128xf32, #tpu.memory_space<vmem>>, %arg3: memref<1x128xf32, #tpu.memory_space<vmem>>, %arg4: memref<128x128xf32, #tpu.memory_space<vmem>>, %arg5: memref<1x128xf32, #tpu.memory_space<vmem>>, %arg6: memref<16x128xf32, #tpu.memory_space<vmem>>) attributes {dimension_semantics = [#tpu.dimension_semantics<parallel>], iteration_bounds = array<i64: 1>, scalar_prefetch = 0 : i64, scratch_operands = 0 : i64, tpu.core_type = #tpu.core_type<tc>, window_params = [{transform_indices = @transform_0, window_bounds = array<i64: 16, 32>}, {pipeline_mode = #tpu.pipeline_mode<synchronous>, transform_indices = @transform_1, window_bounds = array<i64: 32, 128>}, {pipeline_mode = #tpu.pipeline_mode<synchronous>, transform_indices = @transform_2, window_bounds = array<i64: 1, 128>}, {pipeline_mode = #tpu.pipeline_mode<synchronous>, transform_indices = @transform_3, window_bounds = array<i64: 128, 128>}, {pipeline_mode = #tpu.pipeline_mode<synchronous>, transform_indices = @transform_4, window_bounds = array<i64: 1, 128>}, {transform_indices = @transform_5, window_bounds = array<i64: 16, 128>}]} {
    %c0 = arith.constant 0 : index
    %c0_0 = arith.constant 0 : index
    %0 = vector.load %arg1[%c0, %c0_0] : memref<16x32xf32, #tpu.memory_space<vmem>>, vector<16x32xf32>
    %c0_1 = arith.constant 0 : index
    %c0_2 = arith.constant 0 : index
    %1 = vector.load %arg2[%c0_1, %c0_2] : memref<32x128xf32, #tpu.memory_space<vmem>>, vector<32x128xf32>
    %cst = arith.constant dense<0.000000e+00> : vector<16x128xf32>
    %2 = tpu.matmul %0, %1, %cst {dimension_numbers = #tpu.dot_dimension_numbers<[1], [0], [0], [1], [0, 0, 1, 1], [], []>} : vector<16x32xf32>, vector<32x128xf32>, vector<16x128xf32> -> vector<16x128xf32>
    %c0_3 = arith.constant 0 : index
    %c0_4 = arith.constant 0 : index
    %3 = vector.load %arg3[%c0_3, %c0_4] : memref<1x128xf32, #tpu.memory_space<vmem>>, vector<1x128xf32>
    %4 = vector.broadcast %3 : vector<1x128xf32> to vector<16x128xf32>
    %5 = arith.addf %2, %4 : vector<16x128xf32>
    %cst_5 = arith.constant 5.000000e-01 : f32
    %6 = vector.broadcast %cst_5 : f32 to vector<16x128xf32>
    %7 = arith.mulf %6, %5 : vector<16x128xf32>
    %cst_6 = arith.constant 0.707106769 : f32
    %8 = vector.broadcast %cst_6 : f32 to vector<16x128xf32>
    %9 = arith.mulf %5, %8 : vector<16x128xf32>
    %10 = math.erf %9 : vector<16x128xf32>
    %cst_7 = arith.constant 1.000000e+00 : f32
    %11 = vector.broadcast %cst_7 : f32 to vector<16x128xf32>
    %12 = arith.addf %11, %10 : vector<16x128xf32>
    %13 = arith.mulf %7, %12 : vector<16x128xf32>
    %c0_8 = arith.constant 0 : index
    %c0_9 = arith.constant 0 : index
    %14 = vector.load %arg4[%c0_8, %c0_9] : memref<128x128xf32, #tpu.memory_space<vmem>>, vector<128x128xf32>
    %cst_10 = arith.constant dense<0.000000e+00> : vector<16x128xf32>
    %15 = tpu.matmul %13, %14, %cst_10 {dimension_numbers = #tpu.dot_dimension_numbers<[1], [0], [0], [1], [0, 0, 1, 1], [], []>} : vector<16x128xf32>, vector<128x128xf32>, vector<16x128xf32> -> vector<16x128xf32>
    %c0_11 = arith.constant 0 : index
    %c0_12 = arith.constant 0 : index
    %16 = vector.load %arg5[%c0_11, %c0_12] : memref<1x128xf32, #tpu.memory_space<vmem>>, vector<1x128xf32>
    %17 = vector.broadcast %16 : vector<1x128xf32> to vector<16x128xf32>
    %18 = arith.addf %15, %17 : vector<16x128xf32>
    %c0_13 = arith.constant 0 : index
    %c0_14 = arith.constant 0 : index
    %19 = vector.load %arg6[%c0_13, %c0_14] : memref<16x128xf32, #tpu.memory_space<vmem>>, vector<16x128xf32>
    tpu.vector_store %arg6[%c0_13, %c0_14], %18 {strides = array<i32>} : memref<16x128xf32, #tpu.memory_space<vmem>>, vector<16x128xf32>,
    return
  }
  func.func @transform_0(%arg0: i32) -> (i32, i32) {
    %c0_i32 = arith.constant 0 : i32
    %c0_i32_0 = arith.constant 0 : i32
    return %arg0, %c0_i32 : i32, i32
  }
  func.func @transform_1(%arg0: i32) -> (i32, i32) {
    %c0_i32 = arith.constant 0 : i32
    %c0_i32_0 = arith.constant 0 : i32
    %c0_i32_1 = arith.constant 0 : i32
    return %c0_i32, %c0_i32_0 : i32, i32
  }
  func.func @transform_2(%arg0: i32) -> (i32, i32) {
    %c0_i32 = arith.constant 0 : i32
    %c0_i32_0 = arith.constant 0 : i32
    %c0_i32_1 = arith.constant 0 : i32
    return %c0_i32, %c0_i32_0 : i32, i32
  }
  func.func @transform_3(%arg0: i32) -> (i32, i32) {
    %c0_i32 = arith.constant 0 : i32
    %c0_i32_0 = arith.constant 0 : i32
    %c0_i32_1 = arith.constant 0 : i32
    return %c0_i32, %c0_i32_0 : i32, i32
  }
  func.func @transform_4(%arg0: i32) -> (i32, i32) {
    %c0_i32 = arith.constant 0 : i32
    %c0_i32_0 = arith.constant 0 : i32
    %c0_i32_1 = arith.constant 0 : i32
    return %c0_i32, %c0_i32_0 : i32, i32
  }
  func.func @transform_5(%arg0: i32) -> (i32, i32) {
    %c0_i32 = arith.constant 0 : i32
    %c0_i32_0 = arith.constant 0 : i32
    return %arg0, %c0_i32 : i32, i32
  }
}

</mosaic_0001>

<bundles_post_ra>
// kernel: tpu_custom_call.1
= control target key start
LH: loop header
LB: loop body
LE: loop exit
PB: predicated region body
PF: predicated region fallthrough
CT: control target
= control target key end

     0   :  { %10 = vsyncpa [#allocation3], 0  ;;  %s491_s0 = inlined_call_operand.hbm [shape: f32[16,32], index: 0, kind: input, shape index: {}]   ;;  %s492_s1 = inlined_call_operand.hbm [shape: f32[32,128], index: 1, kind: input, shape index: {}]   ;;  %s493_s2 = inlined_call_operand.vmem [shape: f32[1,128], index: 2, kind: input, shape index: {}]   ;;  %s494_s3 = inlined_call_operand.hbm [shape: f32[128,128], index: 3, kind: input, shape index: {}]   ;;  %s495_s4 = inlined_call_operand.vmem [shape: f32[1,128], index: 4, kind: input, shape index: {}]   ;;  %s496_s5 = inlined_call_operand.hbm [shape: f32[16,128], index: 5, kind: output, shape index: {}]  }
   0x1   :  { %11 = vsyncpa [#allocation6], 0 }
   0x2   :  { %12 = vsyncpa [#allocation4], 0  ;;  %s30_s20 = sshll.u32 %s492_s1, 4  ;;  %s395_s21 = smov [#allocation5]   ;;  %s31_s20 = int_to_ptr.hbm [resolvable:$true] %s30_s20 }
   0x3   :  { %s32_s22 = sshll.u32 %s395_s21, 4  ;;  %s17_s25 = sshll.u32 %s491_s0, 4  ;;  %s33_s22 = int_to_ptr.vmem [resolvable:$true] %s32_s22  ;;  %s18_s25 = int_to_ptr.hbm [resolvable:$true] %s17_s25 }
   0x4   :  { %s396_s26 = smov 128   ;;  %s397_s27 = smov 8  }
   0x5   :  { %38 = dma.hbm_to_vmem [thread:$0]  %s31_s20, 512, %s33_s22, [#allocation6], %s396_s26, %s396_s26, %s397_s27  }
   0x6   :  { %s398_s28 = smov [#allocation2]   ;;  %s45_s1 = sshll.u32 %s494_s3, 4  ;;  %s46_s1 = int_to_ptr.hbm [resolvable:$true] %s45_s1 }
   0x7   :  { %s19_s29 = sshll.u32 %s398_s28, 4  ;;  %s399_s0 = smov [#allocation7]   ;;  %s20_s29 = int_to_ptr.vmem [resolvable:$true] %s19_s29 }
   0x8   :  { %25 = dma.hbm_to_vmem [thread:$0]  %s18_s25, 256, %s20_s29, [#allocation3], %s396_s26, %s396_s26, %s397_s27  }
   0x9   :  { %s47_s7 = sshll.u32 %s399_s0, 4  ;;  %s48_s7 = int_to_ptr.vmem [resolvable:$true] %s47_s7 }
   0xa   :  { %53 = dma.hbm_to_vmem [thread:$0]  %s46_s1, 2048, %s48_s7, [#allocation6], %s396_s26, %s396_s26, %s397_s27  }
   0xb   :  { %389 = dma.done.wait [#allocation3], 256  }
   0xc   :  { %390 = vsyncadd [#allocation3], 4294967040 }
   0xd   :  { %391 = dma.done.wait [#allocation6], 2560  }
   0xe   :  { %392 = vsyncadd [#allocation6], 4294964736  ;;  %v73_v0 = vld [vmem:[#allocation5 + $0x18] sm:$0xff]  ;;  %v72_v1 = vld [vmem:[#allocation5 + $0x10] sm:$0xff]  ;;  %vm78_vm0 = vcmask 261120   ;;  %s400_s10 = smov [#allocation8]  }
   0xf   :  { %97 = vmatpush.msra.mxu0 %v73_v0  ;;  %v71_v2 = vld [vmem:[#allocation5 + $0x8] sm:$0xff]  ;;  %v70_v3 = vld [vmem:[#allocation5] sm:$0xff]  ;;  %v68_v4 = vld [vmem:[#allocation2] sm:$0xff]  ;;  %s245_s11 = sshll.u32 %s400_s10, 4  ;;  %s247_s14 = sshll.u32 %s496_s5, 4  ;;  %s246_s11 = int_to_ptr.vmem [resolvable:$true] %s245_s11  ;;  %s248_s14 = int_to_ptr.hbm [resolvable:$true] %s247_s14 }
  0x10   :  { %v69_v5 = vld [vmem:[#allocation2 + $0x8] sm:$0xff]  ;;  %v210_v7 = vld [vmem:[#allocation7 + $0x70] sm:$0xff]  ;;  %v209_v8 = vld [vmem:[#allocation7 + $0x68] sm:$0xff] }
  0x11   :  { %98 = vmatpush.msra.mxu0 %v72_v1  ;;  %v211_v6 = vld [vmem:[#allocation7 + $0x78] sm:$0xff]  ;;  %v208_v9 = vld [vmem:[#allocation7 + $0x60] sm:$0xff]  ;;  %v287_v10 = vld [vmem:[%s493_s2] ss:$0 sm:$0xff] }
  0x12   :  { %216 = vmatpush.msra.mxu1 %v211_v6  ;;  %265 = vmatpush.msra.mxu2 %v211_v6  ;;  %v207_v11 = vld [vmem:[#allocation7 + $0x58] sm:$0xff]  ;;  %v206_v13 = vld [vmem:[#allocation7 + $0x50] sm:$0xff]  ;;  %v205_v15 = vld [vmem:[#allocation7 + $0x48] sm:$0xff] }
  0x13   :  { %99 = vmatpush.msra.mxu0 %v71_v2  ;;  %v204_v17 = vld [vmem:[#allocation7 + $0x40] sm:$0xff]  ;;  %v203_v19 = vld [vmem:[#allocation7 + $0x38] sm:$0xff]  ;;  %v202_v20 = vld [vmem:[#allocation7 + $0x30] sm:$0xff] }
  0x14   :  { %217 = vmatpush.msra.mxu1 %v210_v7  ;;  %266 = vmatpush.msra.mxu2 %v210_v7  ;;  %v201_v23 = vld [vmem:[#allocation7 + $0x28] sm:$0xff]  ;;  %v200_v27 = vld [vmem:[#allocation7 + $0x20] sm:$0xff]  ;;  %v199_v30 = vld [vmem:[#allocation7 + $0x18] sm:$0xff] }
  0x15   :  { %100 = vmatpush.msra.mxu0 %v70_v3  ;;  %v198_v34 = vld [vmem:[#allocation7 + $0x10] sm:$0xff]  ;;  %v197_v37 = vld [vmem:[#allocation7 + $0x8] sm:$0xff]  ;;  %v196_v42 = vld [vmem:[#allocation7] sm:$0xff] }
  0x16   :  { %261 = vmatmul.msk.f32.vlgmr.msra.gmra.mxu0 %vm78_vm0, %v68_v4  ;;  %218 = vmatpush.msra.mxu1 %v209_v8 }
  0x17   :  { %267 = vmatpush.msra.mxu2 %v209_v8 }
  0x18   :  { %219 = vmatpush.msra.mxu1 %v208_v9 }
  0x19   :  { %268 = vmatpush.msra.mxu2 %v208_v9 }
  0x1a   :  { %220 = vmatpush.msra.mxu1 %v207_v11 }
  0x1b   :  { %269 = vmatpush.msra.mxu2 %v207_v11 }
  0x1c   :  { %221 = vmatpush.msra.mxu1 %v206_v13 }
  0x1d   :  { %270 = vmatpush.msra.mxu2 %v206_v13 }
  0x1e   :  { %262 = vmatmul.msk.f32.gmra.mxu0 %vm78_vm0, %v69_v5  ;;  %222 = vmatpush.msra.mxu1 %v205_v15 }
  0x1f   :  { %271 = vmatpush.msra.mxu2 %v205_v15 }
  0x20   :  { %223 = vmatpush.msra.mxu1 %v204_v17 }
  0x21   :  { %272 = vmatpush.msra.mxu2 %v204_v17 }
  0x22   :  { %224 = vmatpush.msra.mxu1 %v203_v19 }
  0x23   :  { %273 = vmatpush.msra.mxu2 %v203_v19 }
  0x24   :  { %225 = vmatpush.msra.mxu1 %v202_v20 }
  0x25   :  { %274 = vmatpush.msra.mxu2 %v202_v20 }
  0x26   :  { %226 = vmatpush.msra.mxu1 %v201_v23 }
  0x27   :  { %275 = vmatpush.msra.mxu2 %v201_v23 }
  0x28   :  { %227 = vmatpush.msra.mxu1 %v200_v27 }
  0x29   :  { %276 = vmatpush.msra.mxu2 %v200_v27 }
  0x2a   :  { %228 = vmatpush.msra.mxu1 %v199_v30 }
  0x2b   :  { %277 = vmatpush.msra.mxu2 %v199_v30 }
  0x2c   :  { %229 = vmatpush.msra.mxu1 %v198_v34 }
  0x2d   :  { %278 = vmatpush.msra.mxu2 %v198_v34 }
  0x2e   :  { %230 = vmatpush.msra.mxu1 %v197_v37 }
  0x2f   :  { %279 = vmatpush.msra.mxu2 %v197_v37 }
  0x30   :  { %231 = vmatpush.msra.mxu1 %v196_v42 }
  0x31   :  { %280 = vmatpush.msra.mxu2 %v196_v42 }
  0x93   :  { %v102_v12 = vpop.f32.mrf.mxu0 }
  0x94   :  { %v452_v14 = vadd.f32 %v287_v10, %v102_v12 }
  0x96   :  { %v455_v16 = vmul.f32 0.70710677, %v452_v14 }
  0x98   :  { %v112_v18 = vmul.f32 %v455_v16, %v455_v16 }
  0x9a   :  { %v459_v21 = vmin.f32 %v112_v18, 16.0 }
  0x9b   :  { %v105_v22 = vpop.f32.mrf.mxu0 }
  0x9c   :  { %v114_v24 = vmul.f32 2.1237322e-06, %v459_v21  ;;  %v462_v25 = vadd.f32 %v287_v10, %v105_v22  ;;  %v125_v26 = vmul.f32 3.8918573e-05, %v459_v21 }
  0x9e   :  { %v115_v28 = vadd.f32 0.00028619796, %v114_v24  ;;  %v466_v29 = vmul.f32 0.70710677, %v462_v25  ;;  %v126_v31 = vadd.f32 0.001143296, %v125_v26 }
  0xa0   :  { %v116_v32 = vmul.f32 %v115_v28, %v459_v21  ;;  %v152_v33 = vmul.f32 %v466_v29, %v466_v29  ;;  %v127_v35 = vmul.f32 %v126_v31, %v459_v21 }
  0xa2   :  { %v153_v36 = vmin.f32 %v152_v33, 16.0  ;;  %v128_v38 = vadd.f32 0.014752088, %v127_v35  ;;  %v117_v39 = vadd.f32 0.0036580483, %v116_v32  ;;  %v108_v33 = vmul.f32 0.5, %v452_v14 }
  0xa3   :  { %v288_v14 = vld [vmem:[%s495_s4] ss:$0 sm:$0xff] }
  0xa4   :  { %v154_v40 = vmul.f32 2.1237322e-06, %v153_v36  ;;  %v165_v41 = vmul.f32 3.8918573e-05, %v153_v36  ;;  %v129_v43 = vmul.f32 %v128_v38, %v459_v21  ;;  %v118_v47 = vmul.f32 %v117_v39, %v459_v21 }
  0xa6   :  { %v155_v44 = vadd.f32 0.00028619796, %v154_v40  ;;  %v166_v45 = vadd.f32 0.001143296, %v165_v41  ;;  %v130_v46 = vadd.f32 0.112945676, %v129_v43 }
  0xa7   :  { %v119_v54 = vadd.f32 0.05243302, %v118_v47  ;;  %v109_v41 = vmul.f32 0.5, %v462_v25 }
  0xa8   :  { %v156_v48 = vmul.f32 %v155_v44, %v153_v36  ;;  %v167_v49 = vmul.f32 %v166_v45, %v153_v36  ;;  %v131_v50 = vmul.f32 %v130_v46, %v459_v21 }
  0xa9   :  { %v120_v60 = vmul.f32 %v119_v54, %v459_v21 }
  0xaa   :  { %v168_v51 = vadd.f32 0.014752088, %v167_v49  ;;  %v157_v52 = vadd.f32 0.0036580483, %v156_v48  ;;  %v132_v53 = vadd.f32 0.4994258, %v131_v50 }
  0xab   :  { %v121_v0 = vadd.f32 0.18741608, %v120_v60 }
  0xac   :  { %v169_v55 = vmul.f32 %v168_v51, %v153_v36  ;;  %v133_v56 = vmul.f32 %v132_v53, %v459_v21  ;;  %v158_v58 = vmul.f32 %v157_v52, %v153_v36 }
  0xad   :  { %v122_v5 = vmul.f32 %v121_v0, %v459_v21 }
  0xae   :  { %v170_v57 = vadd.f32 0.112945676, %v169_v55  ;;  %v134_v59 = vadd.f32 1.0, %v133_v56  ;;  %v159_v63 = vadd.f32 0.05243302, %v158_v58 }
  0xaf   :  { %v123_v10 = vadd.f32 1.1283791, %v122_v5 }
  0xb0   :  { %v171_v61 = vmul.f32 %v170_v57, %v153_v36  ;;  %289 = vrcp.f32 %v134_v59  ;;  %v160_v4 = vmul.f32 %v159_v63, %v153_v36  ;;  %v146_v9 = vand.u32 2147483648, %v134_v59 }
  0xb1   :  { %v144_v12 = vand.u32 2147483647, %v134_v59  ;;  %vm140_vm2 = vweird.f32 %v134_v59  ;;  %v124_v20 = vmul.f32 %v123_v10, %v455_v16 }
  0xb2   :  { %v172_v62 = vadd.f32 0.4994258, %v171_v61  ;;  %v161_v8 = vadd.f32 0.18741608, %v160_v4  ;;  %v147_v18 = vor.u32 1.1754944e-38, %v146_v9 }
  0xb3   :  { %vm145_vm4 = vcmp.eq.f32.partialorder %v144_v12, 8.507059e+37 }
  0xb4   :  { %v173_v1 = vmul.f32 %v172_v62, %v153_v36  ;;  %v162_v17 = vmul.f32 %v161_v8, %v153_v36 }
  0xb6   :  { %v174_v2 = vadd.f32 1.0, %v173_v1  ;;  %v290_v3 = vpop.eup %289  ;;  %v163_v27 = vadd.f32 1.1283791, %v162_v17 }
  0xb7   :  { %v136_v6 = vmul.f32 %v290_v3, %v134_v59  ;;  %vm141_vm1 = vweird.f32 %v290_v3 }
  0xb8   :  { %291 = vrcp.f32 %v174_v2  ;;  %vm142_vm3 = vmor %vm140_vm2, %vm141_vm1  ;;  %v186_v26 = vand.u32 2147483648, %v174_v2  ;;  %v184_v30 = vand.u32 2147483647, %v174_v2  ;;  %vm180_vm6 = vweird.f32 %v174_v2 }
  0xb9   :  { %v137_v7 = vsub.f32 1.0, %v136_v6  ;;  %v164_v16 = vmul.f32 %v163_v27, %v466_v29 }
  0xba   :  { %v187_v35 = vor.u32 1.1754944e-38, %v186_v26  ;;  %vm185_vm8 = vcmp.eq.f32.partialorder %v184_v30, 8.507059e+37 }
  0xbb   :  { %v138_v11 = vmul.f32 %v290_v3, %v137_v7 }
  0xbd   :  { %v139_v15 = vadd.f32 %v290_v3, %v138_v11 }
  0xbe   :  { %v292_v13 = vpop.eup %291 }
  0xbf   :  { %v176_v19 = vmul.f32 %v292_v13, %v174_v2  ;;  %v143_v22 = vsel %vm142_vm3, %v290_v3, %v139_v15  ;;  %vm181_vm5 = vweird.f32 %v292_v13 }
  0xc0   :  { %v148_v21 = vsel %vm145_vm4, %v147_v18, %v143_v22  ;;  %vm182_vm7 = vmor %vm180_vm6, %vm181_vm5 }
  0xc1   :  { %v177_v23 = vsub.f32 1.0, %v176_v19  ;;  %v149_v24 = vmul.f32 %v148_v21, %v124_v20 }
  0xc3   :  { %v178_v28 = vmul.f32 %v292_v13, %v177_v23  ;;  %v263_v31 = vclamps-f32 %v149_v24, 1.0 }
  0xc5   :  { %v179_v32 = vadd.f32 %v292_v13, %v178_v28  ;;  %v192_v34 = vadd.f32 1.0, %v263_v31 }
  0xc7   :  { %v183_v36 = vsel %vm182_vm7, %v292_v13, %v179_v32  ;;  %v194_v37 = vmul.f32 %v192_v34, %v108_v33 }
  0xc8   :  { %v188_v38 = vsel %vm185_vm8, %v187_v35, %v183_v36 }
  0xc9   :  { %v189_v39 = vmul.f32 %v188_v38, %v164_v16  ;;  %232 = vmatmul.f32.vlgmr.msra.gmra.mxu1 %v194_v37 }
  0xcb   :  { %v264_v40 = vclamps-f32 %v189_v39, 1.0 }
  0xcd   :  { %v193_v42 = vadd.f32 1.0, %v264_v40 }
  0xcf   :  { %v195_v43 = vmul.f32 %v193_v42, %v109_v41 }
  0xd1   :  { %235 = vmatmul.f32.vlgmr.msra.gmra.mxu2 %v195_v43 }
 0x146   :  { %v233_v44 = vpop.f32.mrf.mxu1 }
 0x147   :  { %v234_v45 = vadd.f32 %v288_v14, %v233_v44 }
 0x149   :  { %239 = vst [vmem:[#allocation8] sm:$0xff] %v234_v45 }
 0x154   :  { %v236_v29 = vpop.f32.mrf.mxu2 }
 0x155   :  { %v237_v46 = vadd.f32 %v288_v14, %v236_v29 }
 0x157   :  { %240 = vst [vmem:[#allocation8 + $0x8] sm:$0xff] %v237_v46 }
 0x158   :  { %253 = dma.vmem_to_hbm [thread:$0]  %s246_s11, 256, %s248_s14, [#allocation4], %s396_s26, %s396_s26, %s397_s27  }
 0x159   :  { %393 = dma.done.wait [#allocation4], 256  }
 0x15a   :  { %394 = vsyncadd [#allocation4], 4294967040 }
 0x15b   :  { %258 = vsyncpa [#allocation3], 1 }
 0x15c   :  { %259 = vsyncpa [#allocation6], 1 }
 0x15d   :  { %260 = vsyncpa [#allocation4], 1 }

</bundles_post_ra>
